<compile_context>
chip_gen: v7x
topology: tpu7x:2x2x1
jax: 0.10.0
libtpu: 0.0.40
codegen_flags: <defaults>
</compile_context>

<pallas_src>
import jax
import jax.numpy as jnp
from jax.experimental import pallas as pl
from jax.experimental.pallas import tpu as pltpu


_OUT_LANES = 128  # one full f32 vreg row; lane-dense output slab
_VMEM = pl.BlockSpec(memory_space=pltpu.MemorySpace.VMEM)
_SMEM = pl.BlockSpec(memory_space=pltpu.MemorySpace.SMEM)


def _mu_sigma(x_ref, w_ref, b_ref):
    """Linear(input_size, 2) on the VPU/XLU: per-row multiply + lane reduce."""
    x = x_ref[...]                                                       # (B, D) f32
    w = w_ref[...]                                                       # (2, D) f32
    mu = jnp.sum(x * w[0:1, :], axis=-1, keepdims=True) + b_ref[0]       # (B, 1)
    sigma = jnp.sum(x * w[1:2, :], axis=-1, keepdims=True) + b_ref[1]    # (B, 1)
    return mu, sigma


def _write_slab(out_ref, mu, sigma, action):
    """One dense (B, 128) store: columns 0/1/2 = mu/sigma/action, rest zero."""
    col = jax.lax.broadcasted_iota(jnp.int32, out_ref.shape, 1)
    out_ref[...] = jnp.where(col == 0, mu,
                   jnp.where(col == 1, sigma,
                   jnp.where(col == 2, action, 0.0)))


def _actor_kernel_prng(x_ref, w_ref, b_ref, seed_ref, out_ref):
    mu, sigma = _mu_sigma(x_ref, w_ref, b_ref)
    pltpu.prng_seed(seed_ref[0])
    eps = pltpu.stateful_normal(out_ref.shape, jnp.float32)[:, 0:1]      # (B, 1) ~ N(0,1)
    _write_slab(out_ref, mu, sigma, mu + sigma * eps)


def _actor_kernel_eps(x_ref, w_ref, b_ref, eps_ref, out_ref):
    """Fallback kernel: eps supplied from the host as a (B, 1) VMEM input."""
    mu, sigma = _mu_sigma(x_ref, w_ref, b_ref)
    _write_slab(out_ref, mu, sigma, mu + sigma * eps_ref[...])


def _pad_batch(x, mult=8):
    b = x.shape[0]
    bp = ((b + mult - 1) // mult) * mult
    return jnp.pad(x, ((0, bp - b), (0, 0))), bp


@jax.jit
def _actor_forward_prng(states, weight, bias, seed):
    """states (B, D) f32, weight (2, D), bias (2,), seed (1,) int32."""
    b0 = states.shape[0]
    x, bp = _pad_batch(states.astype(jnp.float32))
    out = pl.pallas_call(
        _actor_kernel_prng,
        out_shape=jax.ShapeDtypeStruct((bp, _OUT_LANES), jnp.float32),
        in_specs=[_VMEM, _VMEM, _SMEM, _SMEM],
        out_specs=_VMEM,
    )(x, weight.astype(jnp.float32), bias.astype(jnp.float32),
      seed.astype(jnp.int32))
    return out[:b0, 2], out[:b0, 0], out[:b0, 1]          # action, mu, sigma


@jax.jit
def _actor_forward_eps(states, weight, bias, eps):
    """Fallback path: host-supplied eps (B, 1) ~ N(0,1)."""
    b0 = states.shape[0]
    x, bp = _pad_batch(states.astype(jnp.float32))
    e, _ = _pad_batch(eps.astype(jnp.float32))
    out = pl.pallas_call(
        _actor_kernel_eps,
        out_shape=jax.ShapeDtypeStruct((bp, _OUT_LANES), jnp.float32),
        in_specs=[_VMEM, _VMEM, _SMEM, _VMEM],
        out_specs=_VMEM,
    )(x, weight.astype(jnp.float32), bias.astype(jnp.float32), e)
    return out[:b0, 2], out[:b0, 0], out[:b0, 1]          # action, mu, sigma


_USE_INKERNEL_PRNG = hasattr(pltpu, "prng_seed") and hasattr(pltpu, "stateful_normal")


def run_actor(states, weight, bias, sample_key):
    """Batched forward: states (B, D) -> (action, mu, sigma), each (B,) f32."""
    global _USE_INKERNEL_PRNG
    if _USE_INKERNEL_PRNG:
        try:
            seed = jax.random.randint(sample_key, (1,), 0,
                                      jnp.iinfo(jnp.int32).max, dtype=jnp.int32)
            return _actor_forward_prng(states, weight, bias, seed)
        except Exception:
            # In-kernel stateful PRNG not supported on this build; use host eps instead.
            _USE_INKERNEL_PRNG = False
    eps = jax.random.normal(sample_key, (states.shape[0], 1), jnp.float32)
    return _actor_forward_eps(states, weight, bias, eps)


class ActorPallas:
    """Minimal mirror of the PyTorch Actor module (history kept like the original)."""

    def __init__(self, input_size, num_actions=2, key=None):
        assert num_actions == 2, "Actor.forward unpacks exactly (mu, sigma)"
        if key is None:
            key = jax.random.PRNGKey(0)
        kw, kb = jax.random.split(key)
        bound = 1.0 / float(input_size) ** 0.5            # nn.Linear default init range
        # Weight stays in its natural (2, D) layout: no per-forward transpose / cast.
        self.weight = jax.random.uniform(kw, (num_actions, input_size),
                                         jnp.float32, -bound, bound)
        # Nudge the sigma-row bias positive so Normal(mu, sigma) is usually well-defined.
        # TODO(synk): like the original module, sigma is the raw linear output with no
        # positivity transform (softplus/exp); torch's Normal would reject sigma <= 0.
        self.bias = jax.random.uniform(kb, (num_actions,), jnp.float32,
                                       -bound, bound).at[1].add(1.0)
        self.history = {'mu': [], 'sigma': []}

    def forward(self, state, sample_key):
        state = jnp.asarray(state, jnp.float32)
        single = state.ndim == 1
        states = state[None, :] if single else state
        action, mu, sigma = run_actor(states, self.weight, self.bias, sample_key)
        # Keep device arrays in history (avoids a device->host sync every step).
        self.history['mu'].append(mu[0] if single else mu)
        self.history['sigma'].append(sigma[0] if single else sigma)
        return action[0] if single else action


if __name__ == "__main__":
    key = jax.random.PRNGKey(0)
    k_state, k_params, k_sample, k_sample2 = jax.random.split(key, 4)

    input_size = 32      # small state size
    batch = 8            # f32 sublane multiple; one pallas_call handles the whole batch
    states = jax.random.normal(k_state, (batch, input_size), jnp.float32)

    actor = ActorPallas(input_size, num_actions=2, key=k_params)

    action, mu, sigma = run_actor(states, actor.weight, actor.bias, k_sample)
    jax.block_until_ready((action, mu, sigma))

    # Pure-JAX reference for the linear layer.
    ref = states @ actor.weight.T + actor.bias            # (B, 2)
    assert jnp.allclose(mu, ref[:, 0], atol=2e-5), (mu, ref[:, 0])
    assert jnp.allclose(sigma, ref[:, 1], atol=2e-5), (sigma, ref[:, 1])
    # action = mu + sigma * eps with eps ~ N(0,1): sanity-check the reparameterization.
    assert bool(jnp.all(jnp.isfinite(action)))
    assert bool(jnp.all(jnp.abs(action - mu) <= 8.0 * jnp.abs(sigma) + 1e-4))

    # Module-style call (same compiled kernel, history tracked like the original).
    a2 = actor.forward(states, k_sample2)
    jax.block_until_ready(a2)
    assert a2.shape == (batch,)
    assert len(actor.history['mu']) == 1

    print("KERNEL_OK")
</pallas_src>

<mosaic_0001>
module attributes {stable_mosaic.version = 11 : i64} {
  func.func @_actor_kernel_prng(%arg0: memref<8x32xf32, #tpu.memory_space<vmem>>, %arg1: memref<2x32xf32, #tpu.memory_space<vmem>>, %arg2: memref<2xf32, #tpu.memory_space<smem>>, %arg3: memref<1xi32, #tpu.memory_space<smem>>, %arg4: memref<8x128xf32, #tpu.memory_space<vmem>>) attributes {dimension_semantics = [], scalar_prefetch = 0 : i64, scratch_operands = 0 : i64, tpu.core_type = #tpu.core_type<tc>} {
    %c0 = arith.constant 0 : index
    %c0_0 = arith.constant 0 : index
    %0 = vector.load %arg0[%c0, %c0_0] : memref<8x32xf32, #tpu.memory_space<vmem>>, vector<8x32xf32>
    %c0_1 = arith.constant 0 : index
    %c0_2 = arith.constant 0 : index
    %1 = vector.load %arg1[%c0_1, %c0_2] : memref<2x32xf32, #tpu.memory_space<vmem>>, vector<2x32xf32>
    %2 = vector.extract_strided_slice %1 {offsets = [0, 0], sizes = [1, 32], strides = [1, 1]} : vector<2x32xf32> to vector<1x32xf32>
    %3 = vector.broadcast %2 : vector<1x32xf32> to vector<8x32xf32>
    %4 = arith.mulf %0, %3 : vector<8x32xf32>
    %cst = arith.constant dense<0.000000e+00> : vector<8xf32>
    %5 = vector.multi_reduction <add>, %4, %cst [1] : vector<8x32xf32> to vector<8xf32>
    %6 = vector.shape_cast %5 : vector<8xf32> to vector<8x1xf32>
    %c0_3 = arith.constant 0 : index
    %7 = memref.load %arg2[%c0_3] : memref<2xf32, #tpu.memory_space<smem>>
    %8 = vector.broadcast %7 : f32 to vector<8x1xf32>
    %9 = arith.addf %6, %8 : vector<8x1xf32>
    %10 = vector.extract_strided_slice %1 {offsets = [1, 0], sizes = [1, 32], strides = [1, 1]} : vector<2x32xf32> to vector<1x32xf32>
    %11 = vector.broadcast %10 : vector<1x32xf32> to vector<8x32xf32>
    %12 = arith.mulf %0, %11 : vector<8x32xf32>
    %cst_4 = arith.constant dense<0.000000e+00> : vector<8xf32>
    %13 = vector.multi_reduction <add>, %12, %cst_4 [1] : vector<8x32xf32> to vector<8xf32>
    %14 = vector.shape_cast %13 : vector<8xf32> to vector<8x1xf32>
    %c1 = arith.constant 1 : index
    %15 = memref.load %arg2[%c1] : memref<2xf32, #tpu.memory_space<smem>>
    %16 = vector.broadcast %15 : f32 to vector<8x1xf32>
    %17 = arith.addf %14, %16 : vector<8x1xf32>
    %c0_5 = arith.constant 0 : index
    %18 = memref.load %arg3[%c0_5] : memref<1xi32, #tpu.memory_space<smem>>
    "tpu.prng_set_seed_32"(%18) : (i32) -> ()
    %c0_i32 = arith.constant 0 : i32
    %c0_i32_6 = arith.constant 0 : i32
    %cst_7 = arith.constant -0.99999994 : f32
    %cst_8 = arith.constant 1.000000e+00 : f32
    %19 = vector.broadcast %cst_7 : f32 to vector<1x1xf32>
    %20 = vector.broadcast %cst_8 : f32 to vector<1x1xf32>
    %21 = "tpu.prng_random_bits"() : () -> vector<8x128xi32>
    %c9_i32 = arith.constant 9 : i32
    %22 = vector.broadcast %c9_i32 : i32 to vector<8x128xi32>
    %23 = arith.shrui %21, %22 : vector<8x128xi32>
    %c1065353216_i32 = arith.constant 1065353216 : i32
    %24 = vector.broadcast %c1065353216_i32 : i32 to vector<8x128xi32>
    %25 = arith.ori %23, %24 : vector<8x128xi32>
    %26 = tpu.bitcast %25 : vector<8x128xi32> -> vector<8x128xf32>
    %cst_9 = arith.constant 1.000000e+00 : f32
    %27 = vector.broadcast %cst_9 : f32 to vector<8x128xf32>
    %28 = arith.subf %26, %27 : vector<8x128xf32>
    %29 = arith.subf %20, %19 : vector<1x1xf32>
    %30 = vector.broadcast %29 : vector<1x1xf32> to vector<8x128xf32>
    %31 = arith.mulf %28, %30 : vector<8x128xf32>
    %32 = vector.broadcast %19 : vector<1x1xf32> to vector<8x128xf32>
    %33 = arith.addf %31, %32 : vector<8x128xf32>
    %34 = vector.broadcast %19 : vector<1x1xf32> to vector<8x128xf32>
    %35 = arith.maximumf %34, %33 : vector<8x128xf32>
    %cst_10 = arith.constant 0.000000e+00 : f32
    %36 = vector.broadcast %cst_10 : f32 to vector<8x128xf32>
    %37 = arith.subf %36, %35 : vector<8x128xf32>
    %38 = arith.mulf %35, %37 : vector<8x128xf32>
    %39 = math.log1p %38 : vector<8x128xf32>
    %cst_11 = arith.constant 0.000000e+00 : f32
    %40 = vector.broadcast %cst_11 : f32 to vector<8x128xf32>
    %41 = arith.subf %40, %39 : vector<8x128xf32>
    %cst_12 = arith.constant 5.000000e+00 : f32
    %42 = vector.broadcast %cst_12 : f32 to vector<8x128xf32>
    %43 = arith.cmpf olt, %41, %42 : vector<8x128xf32>
    %cst_13 = arith.constant 2.500000e+00 : f32
    %44 = vector.broadcast %cst_13 : f32 to vector<8x128xf32>
    %45 = arith.subf %41, %44 : vector<8x128xf32>
    %46 = math.sqrt %41 : vector<8x128xf32>
    %cst_14 = arith.constant 3.000000e+00 : f32
    %47 = vector.broadcast %cst_14 : f32 to vector<8x128xf32>
    %48 = arith.subf %46, %47 : vector<8x128xf32>
    %49 = arith.select %43, %45, %48 : vector<8x128xi1>, vector<8x128xf32>
    %cst_15 = arith.constant 2.81022636E-8 : f32
    %cst_16 = arith.constant -2.00214257E-4 : f32
    %50 = vector.broadcast %cst_15 : f32 to vector<8x128xf32>
    %51 = vector.broadcast %cst_16 : f32 to vector<8x128xf32>
    %52 = arith.select %43, %50, %51 : vector<8x128xi1>, vector<8x128xf32>
    %cst_17 = arith.constant 3.43273939E-7 : f32
    %cst_18 = arith.constant 1.00950558E-4 : f32
    %53 = vector.broadcast %cst_17 : f32 to vector<8x128xf32>
    %54 = vector.broadcast %cst_18 : f32 to vector<8x128xf32>
    %55 = arith.select %43, %53, %54 : vector<8x128xi1>, vector<8x128xf32>
    %56 = arith.mulf %52, %49 : vector<8x128xf32>
    %57 = arith.addf %55, %56 : vector<8x128xf32>
    %cst_19 = arith.constant -3.5233877E-6 : f32
    %cst_20 = arith.constant 0.00134934322 : f32
    %58 = vector.broadcast %cst_19 : f32 to vector<8x128xf32>
    %59 = vector.broadcast %cst_20 : f32 to vector<8x128xf32>
    %60 = arith.select %43, %58, %59 : vector<8x128xi1>, vector<8x128xf32>
    %61 = arith.mulf %57, %49 : vector<8x128xf32>
    %62 = arith.addf %60, %61 : vector<8x128xf32>
    %cst_21 = arith.constant -4.39150654E-6 : f32
    %cst_22 = arith.constant -0.00367342844 : f32
    %63 = vector.broadcast %cst_21 : f32 to vector<8x128xf32>
    %64 = vector.broadcast %cst_22 : f32 to vector<8x128xf32>
    %65 = arith.select %43, %63, %64 : vector<8x128xi1>, vector<8x128xf32>
    %66 = arith.mulf %62, %49 : vector<8x128xf32>
    %67 = arith.addf %65, %66 : vector<8x128xf32>
    %cst_23 = arith.constant 2.1858087E-4 : f32
    %cst_24 = arith.constant 0.00573950773 : f32
    %68 = vector.broadcast %cst_23 : f32 to vector<8x128xf32>
    %69 = vector.broadcast %cst_24 : f32 to vector<8x128xf32>
    %70 = arith.select %43, %68, %69 : vector<8x128xi1>, vector<8x128xf32>
    %71 = arith.mulf %67, %49 : vector<8x128xf32>
    %72 = arith.addf %70, %71 : vector<8x128xf32>
    %cst_25 = arith.constant -0.00125372503 : f32
    %cst_26 = arith.constant -0.0076224613 : f32
    %73 = vector.broadcast %cst_25 : f32 to vector<8x128xf32>
    %74 = vector.broadcast %cst_26 : f32 to vector<8x128xf32>
    %75 = arith.select %43, %73, %74 : vector<8x128xi1>, vector<8x128xf32>
    %76 = arith.mulf %72, %49 : vector<8x128xf32>
    %77 = arith.addf %75, %76 : vector<8x128xf32>
    %cst_27 = arith.constant -0.00417768164 : f32
    %cst_28 = arith.constant 0.00943887047 : f32
    %78 = vector.broadcast %cst_27 : f32 to vector<8x128xf32>
    %79 = vector.broadcast %cst_28 : f32 to vector<8x128xf32>
    %80 = arith.select %43, %78, %79 : vector<8x128xi1>, vector<8x128xf32>
    %81 = arith.mulf %77, %49 : vector<8x128xf32>
    %82 = arith.addf %80, %81 : vector<8x128xf32>
    %cst_29 = arith.constant 0.246640727 : f32
    %cst_30 = arith.constant 1.00167406 : f32
    %83 = vector.broadcast %cst_29 : f32 to vector<8x128xf32>
    %84 = vector.broadcast %cst_30 : f32 to vector<8x128xf32>
    %85 = arith.select %43, %83, %84 : vector<8x128xi1>, vector<8x128xf32>
    %86 = arith.mulf %82, %49 : vector<8x128xf32>
    %87 = arith.addf %85, %86 : vector<8x128xf32>
    %cst_31 = arith.constant 1.50140941 : f32
    %cst_32 = arith.constant 2.83297682 : f32
    %88 = vector.broadcast %cst_31 : f32 to vector<8x128xf32>
    %89 = vector.broadcast %cst_32 : f32 to vector<8x128xf32>
    %90 = arith.select %43, %88, %89 : vector<8x128xi1>, vector<8x128xf32>
    %91 = arith.mulf %87, %49 : vector<8x128xf32>
    %92 = arith.addf %90, %91 : vector<8x128xf32>
    %93 = math.absf %35 : vector<8x128xf32>
    %cst_33 = arith.constant 1.000000e+00 : f32
    %94 = vector.broadcast %cst_33 : f32 to vector<8x128xf32>
    %95 = arith.cmpf oeq, %93, %94 : vector<8x128xf32>
    %cst_34 = arith.constant 0x7F800000 : f32
    %96 = vector.broadcast %cst_34 : f32 to vector<8x128xf32>
    %97 = arith.mulf %96, %35 : vector<8x128xf32>
    %98 = arith.mulf %92, %35 : vector<8x128xf32>
    %99 = arith.select %95, %97, %98 : vector<8x128xi1>, vector<8x128xf32>
    %cst_35 = arith.constant 1.41421354 : f32
    %100 = vector.broadcast %cst_35 : f32 to vector<8x128xf32>
    %101 = arith.mulf %100, %99 : vector<8x128xf32>
    %102 = vector.extract_strided_slice %101 {offsets = [0, 0], sizes = [8, 1], strides = [1, 1]} : vector<8x128xf32> to vector<8x1xf32>
    %103 = arith.mulf %17, %102 : vector<8x1xf32>
    %104 = arith.addf %9, %103 : vector<8x1xf32>
    %105 = tpu.iota {dimensions = array<i32: 1>} : vector<8x128xi32>
    %c0_i32_36 = arith.constant 0 : i32
    %106 = vector.broadcast %c0_i32_36 : i32 to vector<8x128xi32>
    %107 = arith.cmpi eq, %105, %106 : vector<8x128xi32>
    %c1_i32 = arith.constant 1 : i32
    %108 = vector.broadcast %c1_i32 : i32 to vector<8x128xi32>
    %109 = arith.cmpi eq, %105, %108 : vector<8x128xi32>
    %c2_i32 = arith.constant 2 : i32
    %110 = vector.broadcast %c2_i32 : i32 to vector<8x128xi32>
    %111 = arith.cmpi eq, %105, %110 : vector<8x128xi32>
    %cst_37 = arith.constant 0.000000e+00 : f32
    %112 = vector.shape_cast %104 : vector<8x1xf32> to vector<8x1xf32>
    %113 = vector.broadcast %112 : vector<8x1xf32> to vector<8x128xf32>
    %114 = vector.broadcast %cst_37 : f32 to vector<8x128xf32>
    %115 = arith.select %111, %113, %114 : vector<8x128xi1>, vector<8x128xf32>
    %116 = vector.shape_cast %17 : vector<8x1xf32> to vector<8x1xf32>
    %117 = vector.broadcast %116 : vector<8x1xf32> to vector<8x128xf32>
    %118 = arith.select %109, %117, %115 : vector<8x128xi1>, vector<8x128xf32>
    %119 = vector.shape_cast %9 : vector<8x1xf32> to vector<8x1xf32>
    %120 = vector.broadcast %119 : vector<8x1xf32> to vector<8x128xf32>
    %121 = arith.select %107, %120, %118 : vector<8x128xi1>, vector<8x128xf32>
    %c0_38 = arith.constant 0 : index
    %c0_39 = arith.constant 0 : index
    %122 = vector.load %arg4[%c0_38, %c0_39] : memref<8x128xf32, #tpu.memory_space<vmem>>, vector<8x128xf32>
    tpu.vector_store %arg4[%c0_38, %c0_39], %121 {strides = array<i32>} : memref<8x128xf32, #tpu.memory_space<vmem>>, vector<8x128xf32>,
    return
  }
}

module attributes {stable_mosaic.version = 11 : i64} {
  func.func @_actor_kernel_eps(%arg0: memref<8x32xf32, #tpu.memory_space<vmem>>, %arg1: memref<2x32xf32, #tpu.memory_space<vmem>>, %arg2: memref<2xf32, #tpu.memory_space<smem>>, %arg3: memref<8x1xf32, #tpu.memory_space<vmem>>, %arg4: memref<8x128xf32, #tpu.memory_space<vmem>>) attributes {dimension_semantics = [], scalar_prefetch = 0 : i64, scratch_operands = 0 : i64, tpu.core_type = #tpu.core_type<tc>} {
    %c0 = arith.constant 0 : index
    %c0_0 = arith.constant 0 : index
    %0 = vector.load %arg0[%c0, %c0_0] : memref<8x32xf32, #tpu.memory_space<vmem>>, vector<8x32xf32>
    %c0_1 = arith.constant 0 : index
    %c0_2 = arith.constant 0 : index
    %1 = vector.load %arg1[%c0_1, %c0_2] : memref<2x32xf32, #tpu.memory_space<vmem>>, vector<2x32xf32>
    %2 = vector.extract_strided_slice %1 {offsets = [0, 0], sizes = [1, 32], strides = [1, 1]} : vector<2x32xf32> to vector<1x32xf32>
    %3 = vector.broadcast %2 : vector<1x32xf32> to vector<8x32xf32>
    %4 = arith.mulf %0, %3 : vector<8x32xf32>
    %cst = arith.constant dense<0.000000e+00> : vector<8xf32>
    %5 = vector.multi_reduction <add>, %4, %cst [1] : vector<8x32xf32> to vector<8xf32>
    %6 = vector.shape_cast %5 : vector<8xf32> to vector<8x1xf32>
    %c0_3 = arith.constant 0 : index
    %7 = memref.load %arg2[%c0_3] : memref<2xf32, #tpu.memory_space<smem>>
    %8 = vector.broadcast %7 : f32 to vector<8x1xf32>
    %9 = arith.addf %6, %8 : vector<8x1xf32>
    %10 = vector.extract_strided_slice %1 {offsets = [1, 0], sizes = [1, 32], strides = [1, 1]} : vector<2x32xf32> to vector<1x32xf32>
    %11 = vector.broadcast %10 : vector<1x32xf32> to vector<8x32xf32>
    %12 = arith.mulf %0, %11 : vector<8x32xf32>
    %cst_4 = arith.constant dense<0.000000e+00> : vector<8xf32>
    %13 = vector.multi_reduction <add>, %12, %cst_4 [1] : vector<8x32xf32> to vector<8xf32>
    %14 = vector.shape_cast %13 : vector<8xf32> to vector<8x1xf32>
    %c1 = arith.constant 1 : index
    %15 = memref.load %arg2[%c1] : memref<2xf32, #tpu.memory_space<smem>>
    %16 = vector.broadcast %15 : f32 to vector<8x1xf32>
    %17 = arith.addf %14, %16 : vector<8x1xf32>
    %c0_5 = arith.constant 0 : index
    %c0_6 = arith.constant 0 : index
    %18 = vector.load %arg3[%c0_5, %c0_6] : memref<8x1xf32, #tpu.memory_space<vmem>>, vector<8x1xf32>
    %19 = arith.mulf %17, %18 : vector<8x1xf32>
    %20 = arith.addf %9, %19 : vector<8x1xf32>
    %21 = tpu.iota {dimensions = array<i32: 1>} : vector<8x128xi32>
    %c0_i32 = arith.constant 0 : i32
    %22 = vector.broadcast %c0_i32 : i32 to vector<8x128xi32>
    %23 = arith.cmpi eq, %21, %22 : vector<8x128xi32>
    %c1_i32 = arith.constant 1 : i32
    %24 = vector.broadcast %c1_i32 : i32 to vector<8x128xi32>
    %25 = arith.cmpi eq, %21, %24 : vector<8x128xi32>
    %c2_i32 = arith.constant 2 : i32
    %26 = vector.broadcast %c2_i32 : i32 to vector<8x128xi32>
    %27 = arith.cmpi eq, %21, %26 : vector<8x128xi32>
    %cst_7 = arith.constant 0.000000e+00 : f32
    %28 = vector.shape_cast %20 : vector<8x1xf32> to vector<8x1xf32>
    %29 = vector.broadcast %28 : vector<8x1xf32> to vector<8x128xf32>
    %30 = vector.broadcast %cst_7 : f32 to vector<8x128xf32>
    %31 = arith.select %27, %29, %30 : vector<8x128xi1>, vector<8x128xf32>
    %32 = vector.shape_cast %17 : vector<8x1xf32> to vector<8x1xf32>
    %33 = vector.broadcast %32 : vector<8x1xf32> to vector<8x128xf32>
    %34 = arith.select %25, %33, %31 : vector<8x128xi1>, vector<8x128xf32>
    %35 = vector.shape_cast %9 : vector<8x1xf32> to vector<8x1xf32>
    %36 = vector.broadcast %35 : vector<8x1xf32> to vector<8x128xf32>
    %37 = arith.select %23, %36, %34 : vector<8x128xi1>, vector<8x128xf32>
    %c0_8 = arith.constant 0 : index
    %c0_9 = arith.constant 0 : index
    %38 = vector.load %arg4[%c0_8, %c0_9] : memref<8x128xf32, #tpu.memory_space<vmem>>, vector<8x128xf32>
    tpu.vector_store %arg4[%c0_8, %c0_9], %37 {strides = array<i32>} : memref<8x128xf32, #tpu.memory_space<vmem>>, vector<8x128xf32>,
    return
  }
}

</mosaic_0001>

<bundles_post_ra>
// kernel: _actor_forward_prng.1
= control target key start
LH: loop header
LB: loop body
LE: loop exit
PB: predicated region body
PF: predicated region fallthrough
CT: control target
= control target key end

     0   :  { %10 = vsyncpa [#allocation4], 0  ;;  %s433_s0 = inlined_call_operand.hbm [shape: f32[8,32], index: 0, kind: input, shape index: {}]   ;;  %s434_s1 = inlined_call_operand.vmem [shape: f32[2,32], index: 1, kind: input, shape index: {}]   ;;  %s435_s2 = inlined_call_operand.vmem [shape: f32[2], index: 2, kind: input, shape index: {}]   ;;  %s436_s3 = inlined_call_operand.<no memory space> [shape: s32[1], index: 3, kind: input, shape index: {}]   ;;  %s437_s4 = inlined_call_operand.vmem [shape: f32[8,128], index: 4, kind: output, shape index: {}]  }
   0x1   :  { %11 = vsyncpa [#allocation5], 0  ;;  %s30_s17 = sshll.u32 %s435_s2, 4  ;;  %s335_s18 = smov [#allocation3]   ;;  %s31_s17 = int_to_ptr.vmem [resolvable:$true] %s30_s17 }
   0x2   :  { %s18_s19 = sshll.u32 %s335_s18, 4  ;;  %s297_s22 = scalar_lea.hbm %s433_s0, 128  ;;  %s19_s19 = int_to_ptr.vmem [resolvable:$true] %s18_s19 }
   0x3   :  { %p298_p0 = scmp.ne.s32.totalorder %s433_s0, %s297_s22  ;;  %p301_p1 = scmp.lt.u32.totalorder %s297_s22, %s433_s0 }
   0x5   :  { %p303_p2 = pnand %p301_p1, %p298_p0 }
   0x7   :  { %306 = shalt.err (!%p303_p2)
}
   0x8   :  { %s307_s27 = scalar_lea.vmem %s19_s19, 128  ;;  %p312_p4 = scmp.lt.s32.totalorder %s19_s19, %s19_s19 }
   0x9   :  { %p308_p3 = scmp.ne.s32.totalorder %s19_s19, %s307_s27  ;;  %p313_p5 = scmp.lt.s32.totalorder %s307_s27, %s307_s27 }
   0xb   :  { %p314_p6 = por %p313_p5, %p312_p4 }
   0xd   :  { %p315_p7 = pnand %p314_p6, %p308_p3 }
   0xf   :  { %318 = shalt.err (!%p315_p7)
}
  0x10   :  { %21 = dma.hbm_to_vmem [thread:$0]  %s433_s0, 128, %s19_s19, [#allocation4]  }
  0x11   :  { %s319_s29 = scalar_lea.vmem %s31_s17, 16  ;;  %p324_p9 = scmp.lt.s32.totalorder %s31_s17, %s31_s17 }
  0x12   :  { %p320_p8 = scmp.ne.s32.totalorder %s31_s17, %s319_s29  ;;  %p325_p10 = scmp.lt.s32.totalorder %s319_s29, %s319_s29 }
  0x14   :  { %p326_p11 = por %p325_p10, %p324_p9 }
  0x16   :  { %p327_p12 = pnand %p326_p11, %p320_p8 }
  0x18   :  { %330 = shalt.err (!%p327_p12)
}
  0x19   :  { %s336_s30 = smov [#allocation6]  }
  0x1a   :  { %33 = dma.vmem_to_smem %s31_s17, 16, %s336_s30, [#allocation5]  }
  0x1b   :  { %331 = dma.done.wait [#allocation4], 128  }
  0x1c   :  { %332 = vsyncadd [#allocation4], 4294967168 }
  0x1d   :  { %333 = dma.done.wait [#allocation5], 16  }
  0x1e   :  { %334 = vsyncadd [#allocation5], 4294967280 }
  0x1f   :  { %42 = sfence }
  0x20   :  { %v45_v0 = vlaneseq  ;;  %v390_v1 = vstv %s436_s3  ;;  %v44_v4 = vld [vmem:[%s434_s1] sm:$0x3]  ;;  %vm50_vm0 = vcmask 261120   ;;  %s275_s1 = sld [smem:[#allocation6 + $0x1]]  ;;  %s54_s3 = sld [smem:[#allocation6]] }
  0x21   :  { %v43_v9 = vld [vmem:[#allocation3] sm:$0xff]  ;;  %v71_v28 = vxor.u32 %v390_v1, %v390_v1 }
  0x22   :  { %v46_v2 = vshrl.u32 %v45_v0, 7  ;;  %v73_v3 = vadd.s32 %v390_v1, %v45_v0 }
  0x23   :  { %v400_v33 = vxor.u32 466688986, %v71_v28 }
  0x24   :  { %v59_v5 = vsub.s32 1, %v46_v2  ;;  %v74_v6 = vadd.s32 %v73_v3, %v73_v3  ;;  %v75_v7 = vshll.u32 %v73_v3, 13  ;;  %v76_v8 = vshrl.u32 %v73_v3, 19 }
  0x25   :  { %v47_v10 = vsub.s32 0, %v46_v2 }
  0x26   :  { %v60_v11 = vrot.slane %v44_v4, %v59_v5  ;;  %v77_v12 = vor.u32 %v76_v8, %v75_v7 }
  0x27   :  { %v48_v13 = vrot.slane %v44_v4, %v47_v10 }
  0x28   :  { %v61_v14 = vmul.f32 %v60_v11, %v43_v9  ;;  %v78_v15 = vxor.u32 %v77_v12, %v74_v6 }
  0x29   :  { %v49_v16 = vmul.f32 %v48_v13, %v43_v9 }
  0x2a   :  { %v62_v17 = vsel %vm50_vm0, %v61_v14, 0.0  ;;  %v79_v18 = vadd.s32 %v78_v15, %v74_v6  ;;  %v80_v19 = vshll.u32 %v78_v15, 15  ;;  %v81_v20 = vshrl.u32 %v78_v15, 17 }
  0x2b   :  { %63 = vadd.xlane.f32.xlu0 %v62_v17  ;;  %v51_v22 = vsel %vm50_vm0, %v49_v16, 0.0 }
  0x2c   :  { %v82_v21 = vor.u32 %v81_v20, %v80_v19 }
  0x2e   :  { %v83_v23 = vxor.u32 %v82_v21, %v79_v18 }
  0x2f   :  { %52 = vadd.xlane.f32.xlu0 %v51_v22 }
  0x30   :  { %v85_v24 = vshll.u32 %v83_v23, 26  ;;  %v86_v25 = vshrl.u32 %v83_v23, 6  ;;  %v84_v26 = vadd.s32 %v83_v23, %v79_v18 }
  0x32   :  { %v87_v27 = vor.u32 %v86_v25, %v85_v24 }
  0x34   :  { %v88_v29 = vxor.u32 %v87_v27, %v84_v26 }
  0x36   :  { %v89_v30 = vadd.s32 %v88_v29, %v84_v26  ;;  %v90_v31 = vshll.u32 %v88_v29, 6  ;;  %v91_v32 = vshrl.u32 %v88_v29, 26 }
  0x38   :  { %v92_v34 = vor.u32 %v91_v32, %v90_v31  ;;  %v94_v36 = vadd.s32 %v89_v30, %v390_v1 }
  0x3a   :  { %v93_v35 = vxor.u32 %v92_v34, %v89_v30 }
  0x3c   :  { %v95_v37 = vadd.s32 %v93_v35, %v400_v33 }
  0x3e   :  { %v96_v38 = vadd.s32 1, %v95_v37 }
  0x40   :  { %v97_v39 = vadd.s32 %v96_v38, %v94_v36  ;;  %v98_v40 = vshll.u32 %v96_v38, 17  ;;  %v99_v41 = vshrl.u32 %v96_v38, 15 }
  0x42   :  { %v100_v42 = vor.u32 %v99_v41, %v98_v40 }
  0x44   :  { %v101_v43 = vxor.u32 %v100_v42, %v97_v39 }
  0x46   :  { %v102_v44 = vadd.s32 %v101_v43, %v97_v39  ;;  %v103_v45 = vshll.u32 %v101_v43, 29  ;;  %v104_v46 = vshrl.u32 %v101_v43, 3 }
  0x48   :  { %v105_v47 = vor.u32 %v104_v46, %v103_v45 }
  0x4a   :  { %v106_v48 = vxor.u32 %v105_v47, %v102_v44 }
  0x4c   :  { %v107_v49 = vadd.s32 %v106_v48, %v102_v44  ;;  %v108_v50 = vshll.u32 %v106_v48, 16  ;;  %v109_v51 = vshrl.u32 %v106_v48, 16  ;;  %v337_v44 = vmov 0  }
  0x4d   :  { %291 = vset.pattern.permute.xlu1 %v337_v44  ;;  %292 = vset.pattern.permute.xlu0 %v337_v44 }
  0x4e   :  { %v110_v52 = vor.u32 %v109_v51, %v108_v50 }
  0x50   :  { %v111_v53 = vxor.u32 %v110_v52, %v107_v49 }
  0x52   :  { %v112_v54 = vadd.s32 %v111_v53, %v107_v49  ;;  %v113_v55 = vshll.u32 %v111_v53, 24  ;;  %v114_v56 = vshrl.u32 %v111_v53, 8 }
  0x54   :  { %v115_v57 = vor.u32 %v114_v56, %v113_v55  ;;  %v117_v59 = vadd.s32 %v112_v54, %v400_v33 }
  0x56   :  { %v116_v58 = vxor.u32 %v115_v57, %v112_v54 }
  0x58   :  { %v118_v60 = vadd.s32 %v116_v58, %v390_v1 }
  0x5a   :  { %v119_v61 = vadd.s32 2, %v118_v60 }
  0x5c   :  { %v120_v62 = vadd.s32 %v119_v61, %v117_v59  ;;  %v121_v63 = vshll.u32 %v119_v61, 13  ;;  %v122_v2 = vshrl.u32 %v119_v61, 19 }
  0x5e   :  { %v123_v3 = vor.u32 %v122_v2, %v121_v63 }
  0x60   :  { %v124_v4 = vxor.u32 %v123_v3, %v120_v62 }
  0x62   :  { %v125_v5 = vadd.s32 %v124_v4, %v120_v62  ;;  %v126_v6 = vshll.u32 %v124_v4, 15  ;;  %v127_v7 = vshrl.u32 %v124_v4, 17 }
  0x64   :  { %v128_v8 = vor.u32 %v127_v7, %v126_v6 }
  0x66   :  { %v129_v9 = vxor.u32 %v128_v8, %v125_v5 }
  0x68   :  { %v130_v10 = vadd.s32 %v129_v9, %v125_v5  ;;  %v131_v11 = vshll.u32 %v129_v9, 26  ;;  %v132_v12 = vshrl.u32 %v129_v9, 6 }
  0x6a   :  { %v133_v13 = vor.u32 %v132_v12, %v131_v11 }
  0x6c   :  { %v134_v14 = vxor.u32 %v133_v13, %v130_v10 }
  0x6e   :  { %v135_v15 = vadd.s32 %v134_v14, %v130_v10  ;;  %v136_v16 = vshll.u32 %v134_v14, 6  ;;  %v137_v17 = vshrl.u32 %v134_v14, 26 }
  0x70   :  { %v138_v18 = vor.u32 %v137_v17, %v136_v16  ;;  %v140_v20 = vadd.s32 %v135_v15, %v390_v1 }
  0x72   :  { %v139_v19 = vxor.u32 %v138_v18, %v135_v15 }
  0x74   :  { %v141_v21 = vadd.s32 %v139_v19, %v390_v1 }
  0x76   :  { %v142_v22 = vadd.s32 3, %v141_v21 }
  0x78   :  { %v143_v23 = vadd.s32 %v142_v22, %v140_v20  ;;  %v144_v24 = vshll.u32 %v142_v22, 17  ;;  %v145_v25 = vshrl.u32 %v142_v22, 15 }
  0x7a   :  { %v146_v26 = vor.u32 %v145_v25, %v144_v24 }
  0x7c   :  { %v147_v27 = vxor.u32 %v146_v26, %v143_v23 }
  0x7e   :  { %v148_v28 = vadd.s32 %v147_v27, %v143_v23  ;;  %v149_v29 = vshll.u32 %v147_v27, 29  ;;  %v150_v30 = vshrl.u32 %v147_v27, 3 }
  0x80   :  { %v151_v31 = vor.u32 %v150_v30, %v149_v29 }
  0x82   :  { %v152_v32 = vxor.u32 %v151_v31, %v148_v28 }
  0x84   :  { %v153_v34 = vadd.s32 %v152_v32, %v148_v28  ;;  %v154_v35 = vshll.u32 %v152_v32, 16  ;;  %v155_v36 = vshrl.u32 %v152_v32, 16 }
  0x86   :  { %v156_v37 = vor.u32 %v155_v36, %v154_v35  ;;  %v338_v35 = vmov -0.00020021426  }
  0x88   :  { %v157_v38 = vxor.u32 %v156_v37, %v153_v34 }
  0x8a   :  { %v158_v39 = vadd.s32 %v157_v38, %v153_v34  ;;  %v159_v40 = vshll.u32 %v157_v38, 24  ;;  %v160_v41 = vshrl.u32 %v157_v38, 8  ;;  %v339_v38 = vmov 0.00010095056  }
  0x8c   :  { %v161_v42 = vor.u32 %v160_v41, %v159_v40  ;;  %v163_v45 = vadd.s32 %v158_v39, %v390_v1 }
  0x8e   :  { %v162_v43 = vxor.u32 %v161_v42, %v158_v39  ;;  %v340_v42 = vmov 0.0013493432  }
  0x90   :  { %v164_v46 = vadd.s32 %v162_v43, %v400_v33 }
  0x92   :  { %v165_v47 = vadd.s32 4, %v164_v46  ;;  %v341_v46 = vmov -0.0036734284  }
  0x94   :  { %v166_v48 = vadd.s32 %v165_v47, %v163_v45  ;;  %v167_v49 = vshll.u32 %v165_v47, 13  ;;  %v168_v50 = vshrl.u32 %v165_v47, 19 }
  0x96   :  { %v169_v51 = vor.u32 %v168_v50, %v167_v49  ;;  %v342_v50 = vmov 0.0057395077  }
  0x98   :  { %v170_v52 = vxor.u32 %v169_v51, %v166_v48 }
  0x9a   :  { %v171_v53 = vadd.s32 %v170_v52, %v166_v48  ;;  %v172_v54 = vshll.u32 %v170_v52, 15  ;;  %v173_v55 = vshrl.u32 %v170_v52, 17 }
  0x9c   :  { %v174_v56 = vor.u32 %v173_v55, %v172_v54  ;;  %v343_v54 = vmov -0.0076224613  }
  0x9e   :  { %v175_v57 = vxor.u32 %v174_v56, %v171_v53 }
  0xa0   :  { %v176_v58 = vadd.s32 %v175_v57, %v171_v53  ;;  %v177_v59 = vshll.u32 %v175_v57, 26  ;;  %v178_v60 = vshrl.u32 %v175_v57, 6 }
  0xa2   :  { %v179_v61 = vor.u32 %v178_v60, %v177_v59 }
  0xa4   :  { %v180_v62 = vxor.u32 %v179_v61, %v176_v58 }
  0xa6   :  { %v181_v63 = vadd.s32 %v180_v62, %v176_v58  ;;  %v182_v2 = vshll.u32 %v180_v62, 6  ;;  %v183_v3 = vshrl.u32 %v180_v62, 26  ;;  %v344_v58 = vmov 0.0094388705  }
  0xa7   :  { %v345_v62 = vmov 1.001674  }
  0xa8   :  { %v184_v4 = vor.u32 %v183_v3, %v182_v2  ;;  %v186_v6 = vadd.s32 %v181_v63, %v400_v33 }
  0xaa   :  { %v185_v5 = vxor.u32 %v184_v4, %v181_v63 }
  0xac   :  { %v187_v7 = vadd.s32 %v185_v5, %v390_v1  ;;  %v346_v5 = vmov 2.8329768  }
  0xae   :  { %v188_v8 = vadd.s32 5, %v187_v7 }
  0xb0   :  { %v189_v9 = vxor.u32 %v188_v8, %v186_v6 }
  0xb2   :  { %190 = set.rngseed %v189_v9  ;;  %v66_v9 = vstv %s275_s1 }
  0xb3   :  { %v191_v10 = vrng }
  0xb4   :  { %v192_v11 = vshrl.u32 %v191_v10, 9 }
  0xb6   :  { %v193_v12 = vor.u32 1065353216, %v192_v11 }
  0xb8   :  { %v276_v13 = vadd.f32 -1.0, %v193_v12  ;;  %v64_v3 = vpop.xlane.xlu0 %63  ;;  %v55_v12 = vstv %s54_s3 }
  0xba   :  { %v196_v14 = vmul.f32 2.0, %v276_v13 }
  0xbc   :  { %v197_v15 = vadd.f32 -0.99999994, %v196_v14  ;;  %v53_v13 = vpop.xlane.xlu0 %52 }
  0xbe   :  { %v412_v16 = vmax.f32 %v197_v15, -0.99999994 }
  0xc0   :  { %v199_v17 = vsub.f32 0.0, %v412_v16  ;;  %v247_v7 = vand.u32 2147483647, %v412_v16  ;;  %v249_v10 = vmul.f32 inf, %v412_v16 }
  0xc2   :  { %v200_v18 = vmul.f32 %v199_v17, %v412_v16  ;;  %vm248_vm5 = vcmp.eq.f32.partialorder %v247_v7, 1.0  ;;  %v67_v17 = vadd.f32 %v66_v9, %v64_v3 }
  0xc4   :  { %v201_v19 = vadd.f32 1.0, %v200_v18  ;;  %v204_v33 = vmul.f32 -0.5, %v200_v18  ;;  %v207_v1 = vand.u32 2147483647, %v200_v18 }
  0xc6   :  { %293 = vlog2.f32 %v201_v19  ;;  %v205_v20 = vadd.f32 1.0, %v204_v33  ;;  %vm208_vm1 = vcmp.lt.f32.partialorder %v207_v1, 0.0004427343 }
  0xc8   :  { %v206_v23 = vmul.f32 %v205_v20, %v200_v18  ;;  %v56_v18 = vadd.f32 %v55_v12, %v53_v13  ;;  %v256_v20 = vand.u32 127, %v45_v0 }
  0xca   :  { %vm259_vm6 = vcmp.eq.s32.totalorder %v256_v20, 2  ;;  %vm258_vm7 = vcmp.eq.s32.totalorder %v256_v20, 1  ;;  %vm257_vm8 = vcmp.eq.s32.totalorder %v256_v20, 0 }
  0xd0   :  { %v294_v21 = vpop.eup %293 }
  0xd1   :  { %v203_v22 = vmul.f32 0.6931472, %v294_v21 }
  0xd3   :  { %v209_v24 = vsel %vm208_vm1, %v206_v23, %v203_v22 }
  0xd4   :  { %v210_v25 = vsub.f32 0.0, %v209_v24 }
  0xd6   :  { %295 = vrsqrt.f32 %v210_v25  ;;  %vm215_vm2 = vcmp.eq.f32.partialorder %v210_v25, inf  ;;  %v218_v28 = vand.u32 2147483648, %v210_v25  ;;  %vm217_vm3 = vcmp.eq.f32.partialorder %v210_v25, 0.0 }
  0xd7   :  { %vm211_vm4 = vcmp.lt.f32.partialorder %v210_v25, 5.0  ;;  %v277_v31 = vadd.f32 -2.5, %v210_v25 }
  0xd8   :  { %v222_v36 = vsel %vm211_vm4, 2.8102264e-08, %v338_v35  ;;  %v223_v39 = vsel %vm211_vm4, 3.4327394e-07, %v339_v38  ;;  %v226_v43 = vsel %vm211_vm4, -3.5233877e-06, %v340_v42 }
  0xd9   :  { %v229_v47 = vsel %vm211_vm4, -4.3915065e-06, %v341_v46  ;;  %v232_v51 = vsel %vm211_vm4, 0.00021858087, %v342_v50  ;;  %v235_v55 = vsel %vm211_vm4, -0.001253725, %v343_v54 }
  0xda   :  { %v238_v59 = vsel %vm211_vm4, -0.0041776816, %v344_v58  ;;  %v241_v63 = vsel %vm211_vm4, 0.24664073, %v345_v62  ;;  %v244_v6 = vsel %vm211_vm4, 1.5014094, %v346_v5 }
  0xe0   :  { %v296_v26 = vpop.eup %295 }
  0xe1   :  { %v214_v27 = vmul.f32 %v296_v26, %v210_v25 }
  0xe3   :  { %v216_v29 = vsel %vm215_vm2, %v210_v25, %v214_v27 }
  0xe4   :  { %v219_v30 = vsel %vm217_vm3, %v218_v28, %v216_v29 }
  0xe5   :  { %v278_v32 = vadd.f32 -3.0, %v219_v30 }
  0xe7   :  { %v221_v34 = vsel %vm211_vm4, %v277_v31, %v278_v32 }
  0xe8   :  { %v224_v37 = vmul.f32 %v222_v36, %v221_v34 }
  0xea   :  { %v225_v40 = vadd.f32 %v224_v37, %v223_v39 }
  0xec   :  { %v227_v41 = vmul.f32 %v225_v40, %v221_v34 }
  0xee   :  { %v228_v44 = vadd.f32 %v227_v41, %v226_v43 }
  0xf0   :  { %v230_v45 = vmul.f32 %v228_v44, %v221_v34 }
  0xf2   :  { %v231_v48 = vadd.f32 %v230_v45, %v229_v47 }
  0xf4   :  { %v233_v49 = vmul.f32 %v231_v48, %v221_v34 }
  0xf6   :  { %v234_v52 = vadd.f32 %v233_v49, %v232_v51 }
  0xf8   :  { %v236_v53 = vmul.f32 %v234_v52, %v221_v34 }
  0xfa   :  { %v237_v56 = vadd.f32 %v236_v53, %v235_v55 }
  0xfc   :  { %v239_v57 = vmul.f32 %v237_v56, %v221_v34 }
  0xfe   :  { %v240_v60 = vadd.f32 %v239_v57, %v238_v59 }
 0x100   :  { %v242_v61 = vmul.f32 %v240_v60, %v221_v34 }
 0x102   :  { %v243_v2 = vadd.f32 %v242_v61, %v241_v63 }
 0x104   :  { %v245_v4 = vmul.f32 %v243_v2, %v221_v34 }
 0x106   :  { %v246_v8 = vadd.f32 %v245_v4, %v244_v6 }
 0x108   :  { %v250_v11 = vmul.f32 %v246_v8, %v412_v16 }
 0x10a   :  { %v251_v14 = vsel %vm248_vm5, %v249_v10, %v250_v11 }
 0x10b   :  { %v252_v15 = vmul.f32 1.4142135, %v251_v14 }
 0x10d   :  { %v253_v19 = vmul.f32 %v252_v15, %v67_v17 }
 0x10f   :  { %v254_v33 = vadd.f32 %v253_v19, %v56_v18 }
 0x111   :  { %262 = vperm.xlu1 %291, %v254_v33  }
 0x190   :  { %v263_v1 = vpop.permute.xlu1 %262 }
 0x191   :  { %v265_v21 = vsel %vm259_vm6, %v263_v1, 0.0 }
 0x192   :  { %v266_v22 = vsel %vm258_vm7, %v67_v17, %v265_v21 }
 0x193   :  { %v267_v23 = vsel %vm257_vm8, %v56_v18, %v266_v22 }
 0x194   :  { %268 = vst [vmem:[%s437_s4] sm:$0xff] %v267_v23 }
 0x195   :  { %273 = vsyncpa [#allocation4], 1 }
 0x196   :  { %274 = vsyncpa [#allocation5], 1 }

// kernel: _actor_forward_eps.1
= control target key start
LH: loop header
LB: loop body
LE: loop exit
PB: predicated region body
PF: predicated region fallthrough
CT: control target
= control target key end

     0   :  { %9 = vsyncpa [#allocation3], 0  ;;  %s138_s0 = inlined_call_operand.vmem [shape: f32[8,32], index: 0, kind: input, shape index: {}]   ;;  %s139_s1 = inlined_call_operand.vmem [shape: f32[2,32], index: 1, kind: input, shape index: {}]   ;;  %s140_s2 = inlined_call_operand.vmem [shape: f32[2], index: 2, kind: input, shape index: {}]   ;;  %s141_s3 = inlined_call_operand.vmem [shape: f32[8,1], index: 3, kind: input, shape index: {}]   ;;  %s142_s4 = inlined_call_operand.vmem [shape: f32[8,128], index: 4, kind: output, shape index: {}]  }
   0x1   :  { %s20_s17 = sshll.u32 %s140_s2, 4  ;;  %s21_s17 = int_to_ptr.vmem [resolvable:$true] %s20_s17 }
   0x2   :  { %s82_s18 = scalar_lea.vmem %s21_s17, 16  ;;  %p87_p1 = scmp.lt.s32.totalorder %s21_s17, %s21_s17 }
   0x3   :  { %p83_p0 = scmp.ne.s32.totalorder %s21_s17, %s82_s18  ;;  %p88_p2 = scmp.lt.s32.totalorder %s82_s18, %s82_s18 }
   0x5   :  { %p89_p3 = por %p88_p2, %p87_p1 }
   0x7   :  { %p90_p4 = pnand %p89_p3, %p83_p0 }
   0x9   :  { %93 = shalt.err (!%p90_p4)
}
   0xa   :  { %s96_s19 = smov [#allocation2]  }
   0xb   :  { %23 = dma.vmem_to_smem %s21_s17, 16, %s96_s19, [#allocation3]  }
   0xc   :  { %94 = dma.done.wait [#allocation3], 16  }
   0xd   :  { %95 = vsyncadd [#allocation3], 4294967280 }
   0xe   :  { %29 = sfence }
   0xf   :  { %v32_v0 = vlaneseq  ;;  %v31_v2 = vld [vmem:[%s139_s1] sm:$0x3]  ;;  %vm37_vm0 = vcmask 261120   ;;  %v97_v12 = vmov 0   ;;  %s77_s23 = sld [smem:[#allocation2 + $0x1]]  ;;  %s41_s1 = sld [smem:[#allocation2]] }
  0x10   :  { %v30_v5 = vld [vmem:[%s138_s0] sm:$0xff]  ;;  %80 = vset.pattern.permute.xlu1 %v97_v12  ;;  %81 = vset.pattern.permute.xlu0 %v97_v12 }
  0x11   :  { %v33_v1 = vshrl.u32 %v32_v0, 7  ;;  %v55_v16 = vld [vmem:[%s141_s3] sm:$0xff]  ;;  %v59_v22 = vand.u32 127, %v32_v0 }
  0x13   :  { %v46_v3 = vsub.s32 1, %v33_v1  ;;  %v34_v4 = vsub.s32 0, %v33_v1  ;;  %vm62_vm1 = vcmp.eq.s32.totalorder %v59_v22, 2  ;;  %vm61_vm2 = vcmp.eq.s32.totalorder %v59_v22, 1 }
  0x14   :  { %vm60_vm3 = vcmp.eq.s32.totalorder %v59_v22, 0 }
  0x15   :  { %v47_v6 = vrot.slane %v31_v2, %v46_v3  ;;  %v35_v7 = vrot.slane %v31_v2, %v34_v4  ;;  %v53_v13 = vstv %s77_s23  ;;  %v42_v17 = vstv %s41_s1 }
  0x17   :  { %v48_v8 = vmul.f32 %v47_v6, %v30_v5  ;;  %v36_v9 = vmul.f32 %v35_v7, %v30_v5 }
  0x19   :  { %v49_v10 = vsel %vm37_vm0, %v48_v8, 0.0  ;;  %v38_v11 = vsel %vm37_vm0, %v36_v9, 0.0 }
  0x1a   :  { %50 = vadd.xlane.f32.xlu0 %v49_v10 }
  0x1e   :  { %39 = vadd.xlane.f32.xlu0 %v38_v11 }
  0xa7   :  { %v51_v14 = vpop.xlane.xlu0 %50 }
  0xa8   :  { %v54_v15 = vadd.f32 %v53_v13, %v51_v14 }
  0xaa   :  { %v56_v19 = vmul.f32 %v55_v16, %v54_v15 }
  0xab   :  { %v40_v18 = vpop.xlane.xlu0 %39 }
  0xac   :  { %v43_v20 = vadd.f32 %v42_v17, %v40_v18 }
  0xae   :  { %v57_v21 = vadd.f32 %v56_v19, %v43_v20 }
  0xb0   :  { %65 = vperm.xlu1 %80, %v57_v21  }
 0x12f   :  { %v66_v23 = vpop.permute.xlu1 %65 }
 0x130   :  { %v68_v24 = vsel %vm62_vm1, %v66_v23, 0.0 }
 0x131   :  { %v69_v25 = vsel %vm61_vm2, %v54_v15, %v68_v24 }
 0x132   :  { %v70_v26 = vsel %vm60_vm3, %v43_v20, %v69_v25 }
 0x133   :  { %71 = vst [vmem:[%s142_s4] sm:$0xff] %v70_v26 }
 0x134   :  { %76 = vsyncpa [#allocation3], 1 }

</bundles_post_ra>
